<compile_context>
chip_gen: v7x
topology: tpu7x:2x2x1
jax: 0.10.0
libtpu: 0.0.40
codegen_flags: <defaults>
</compile_context>

<pallas_src>
import numpy as np
import jax
import jax.numpy as jnp
from jax.experimental import pallas as pl
from jax.experimental.pallas import tpu as pltpu


def _fnn4_kernel(x_ref, w1_ref, wmid_ref, bstk_ref, w5_ref, b5_ref, o_ref):
    # Activations are (features, tm): the batch sits on the 128-wide lane axis,
    # so loads, the EUP tanh and stores are all lane-dense.
    h = x_ref[...]                                                 # (D_in, tm) f32
    # Layer 1: K = D_in is tiny -> keep the dot in f32 for input fidelity.
    h = jnp.tanh(
        jnp.dot(w1_ref[...], h, preferred_element_type=jnp.float32)
        + bstk_ref[0])                                             # (H, tm) f32
    # Layers 2..4: MXU dots in the weight dtype (bf16 by default),
    # f32 accumulate / bias-add / tanh.  Static unroll.
    for i in range(3):
        w = wmid_ref[i]
        z = jnp.dot(w, h.astype(w.dtype), preferred_element_type=jnp.float32)
        h = jnp.tanh(z + bstk_ref[i + 1])
    # Layer 5 (no tanh).
    w5 = w5_ref[...]
    y = jnp.dot(w5, h.astype(w5.dtype), preferred_element_type=jnp.float32)
    o_ref[...] = (y + b5_ref[...]).astype(o_ref.dtype)


def _num_tensorcores():
    """Best-effort TensorCore count (2 on v7x, else 1); safe fallbacks."""
    try:
        info = pltpu.get_tpu_info()
        for attr in ("num_cores", "core_count", "num_tensorcores",
                     "tensorcore_count"):
            v = getattr(info, attr, None)
            if isinstance(v, int) and v > 0:
                return v
    except Exception:
        pass
    try:
        kind = jax.devices()[0].device_kind.lower()
        if "v7" in kind or "7x" in kind:
            return 2
    except Exception:
        pass
    return 1


def _pick_tile(N, num_cores, tm_max=8192):
    """Smallest multiple-of-128 tile covering N in a core-balanced step count.

    Single step for small N on single-TC parts (v5e/v6e); step count rounded
    up to a multiple of the core count on v7x so both TCs get equal work.
    Padding waste is bounded to <128 columns per step.
    """
    steps = max(1, pl.cdiv(N, tm_max))
    if num_cores > 1 and N >= num_cores * 128:
        steps = pl.cdiv(steps, num_cores) * num_cores
    tm = max(128, pl.cdiv(pl.cdiv(N, steps), 128) * 128)
    return tm


def fnn4_forward_fb(x_fb, params, *, a1=0.1, tm=None,
                    dot_dtype=jnp.bfloat16, tm_max=8192):
    """Transpose-free entry point.

    x_fb: (D_in, N) f32 (features on sublanes, batch on lanes).
    Returns (D_out, N) f32.  params: PyTorch-shaped weights (out, in),
    biases (out,).
    """
    D_in, N = x_fb.shape
    H = params["w1"].shape[0]
    D_out = params["w5"].shape[0]

    if tm is None:
        tm = _pick_tile(N, _num_tensorcores(), tm_max)

    # scale = n * a1 = (1/a1) * a1 (exactly 1.0 for a1=0.1); fold into params.
    scale = (1.0 / float(a1)) * float(a1)

    def prep_w(w, dt):
        w = jnp.asarray(w, jnp.float32)
        if scale != 1.0:
            w = w * scale
        return w.astype(dt)

    def prep_b(b):
        b = jnp.asarray(b, jnp.float32).reshape(-1, 1)
        return b * scale if scale != 1.0 else b

    # Layer-1 weight stays f32 (f32 input dot); mid/out weights use dot_dtype.
    w1 = prep_w(params["w1"], jnp.float32)                          # (H, D_in)
    wmid = jnp.stack([prep_w(params["w2"], dot_dtype),
                      prep_w(params["w3"], dot_dtype),
                      prep_w(params["w4"], dot_dtype)])             # (3, H, H)
    bstk = jnp.stack([prep_b(params["b1"]), prep_b(params["b2"]),
                      prep_b(params["b3"]), prep_b(params["b4"])])  # (4, H, 1)
    w5 = prep_w(params["w5"], dot_dtype)                            # (D_out, H)
    b5 = prep_b(params["b5"])                                       # (D_out, 1)

    xt = jnp.asarray(x_fb, jnp.float32)
    steps = pl.cdiv(N, tm)
    Np = steps * tm
    if Np != N:
        # Padded columns compute tanh(bias) and are sliced off (<128 per step).
        xt = jnp.pad(xt, ((0, 0), (0, Np - N)))

    full = lambda shape: pl.BlockSpec(shape, lambda i: (0,) * len(shape))

    grid_spec = pltpu.PrefetchScalarGridSpec(
        num_scalar_prefetch=0,
        grid=(steps,),
        in_specs=[
            pl.BlockSpec((D_in, tm), lambda i: (0, i)),   # x tile
            full((H, D_in)),                              # w1 (f32)
            full((3, H, H)),                              # w2..w4 stacked
            full((4, H, 1)),                              # b1..b4 stacked
            full((D_out, H)),                             # w5
            full((D_out, 1)),                             # b5
        ],
        out_specs=pl.BlockSpec((D_out, tm), lambda i: (0, i)),
    )

    out = pl.pallas_call(
        _fnn4_kernel,
        out_shape=jax.ShapeDtypeStruct((D_out, Np), jnp.float32),
        grid_spec=grid_spec,
        compiler_params=pltpu.CompilerParams(
            dimension_semantics=("parallel",)),
    )(xt, w1, wmid, bstk, w5, b5)

    return out[:, :N] if Np != N else out


def fnn4_forward(x, params, **kw):
    """PyTorch-layout convenience wrapper: (N, D_in) -> (N, D_out).

    Adds two host-side transposes; prefer fnn4_forward_fb if the producer /
    consumer can keep the (features, batch) layout.
    """
    return fnn4_forward_fb(jnp.asarray(x, jnp.float32).T, params, **kw).T


def init_fnn4_params(key, D_in, H, D_out):
    """Matches the PyTorch module's normal_ init; PyTorch-native shapes."""
    ks = jax.random.split(key, 10)

    def w(k, fan_out, fan_in):
        std = np.sqrt(2.0 / (fan_in + fan_out))
        return std * jax.random.normal(k, (fan_out, fan_in), jnp.float32)

    def b(k, fan_out):
        return jax.random.normal(k, (fan_out,), jnp.float32)

    return {
        "w1": w(ks[0], H, D_in),  "b1": b(ks[1], H),
        "w2": w(ks[2], H, H),     "b2": b(ks[3], H),
        "w3": w(ks[4], H, H),     "b3": b(ks[5], H),
        "w4": w(ks[6], H, H),     "b4": b(ks[7], H),
        "w5": w(ks[8], D_out, H), "b5": b(ks[9], D_out),
    }


def fnn4_reference(x, params, a1=0.1):
    scale = (1.0 / a1) * a1
    h = x
    for i in range(1, 5):
        h = jnp.tanh(scale * (h @ params[f"w{i}"].T + params[f"b{i}"]))
    return scale * (h @ params["w5"].T + params["b5"])


if __name__ == "__main__":
    D_in, H, D_out = 3, 32, 3     # coordinates-in / stresses-out MLP
    N = 256                       # batch of collocation points

    key = jax.random.PRNGKey(0)
    kx, kp = jax.random.split(key)
    x = jax.random.normal(kx, (N, D_in), jnp.float32)
    params = init_fnn4_params(kp, D_in, H, D_out)

    y_ref = fnn4_reference(x, params)

    # f32-dot path: exact check, transpose-free (features, batch) entry point.
    y_f32 = fnn4_forward_fb(x.T, params, dot_dtype=jnp.float32)
    y_f32 = jax.block_until_ready(y_f32)
    np.testing.assert_allclose(np.asarray(y_f32), np.asarray(y_ref.T),
                               rtol=1e-5, atol=1e-5)

    # Default bf16-MXU-dot path (layer 1 kept f32): looser tolerance.
    y_bf = fnn4_forward_fb(x.T, params)
    y_bf = jax.block_until_ready(y_bf)
    np.testing.assert_allclose(np.asarray(y_bf), np.asarray(y_ref.T),
                               rtol=5e-2, atol=5e-2)

    # Ragged batch: exercises minimal-padding tile selection via the
    # PyTorch-layout convenience wrapper.
    Nr = 200
    xr = jax.random.normal(kx, (Nr, D_in), jnp.float32)
    yr = fnn4_forward(xr, params, dot_dtype=jnp.float32)
    yr = jax.block_until_ready(yr)
    np.testing.assert_allclose(np.asarray(yr),
                               np.asarray(fnn4_reference(xr, params)),
                               rtol=1e-5, atol=1e-5)

    print("KERNEL_OK")
</pallas_src>

<mosaic_0001>
module attributes {stable_mosaic.version = 11 : i64} {
  func.func @_fnn4_kernel(%arg0: i32, %arg1: memref<3x256xf32, #tpu.memory_space<vmem>>, %arg2: memref<32x3xf32, #tpu.memory_space<vmem>>, %arg3: memref<3x32x32xf32, #tpu.memory_space<vmem>>, %arg4: memref<4x32x1xf32, #tpu.memory_space<vmem>>, %arg5: memref<3x32xf32, #tpu.memory_space<vmem>>, %arg6: memref<3x1xf32, #tpu.memory_space<vmem>>, %arg7: memref<3x256xf32, #tpu.memory_space<vmem>>) attributes {dimension_semantics = [#tpu.dimension_semantics<parallel>], iteration_bounds = array<i64: 1>, scalar_prefetch = 0 : i64, scratch_operands = 0 : i64, tpu.core_type = #tpu.core_type<tc>, window_params = [{transform_indices = @transform_0, window_bounds = array<i64: 3, 256>}, {pipeline_mode = #tpu.pipeline_mode<synchronous>, transform_indices = @transform_1, window_bounds = array<i64: 32, 3>}, {pipeline_mode = #tpu.pipeline_mode<synchronous>, transform_indices = @transform_2, window_bounds = array<i64: 3, 32, 32>}, {pipeline_mode = #tpu.pipeline_mode<synchronous>, transform_indices = @transform_3, window_bounds = array<i64: 4, 32, 1>}, {pipeline_mode = #tpu.pipeline_mode<synchronous>, transform_indices = @transform_4, window_bounds = array<i64: 3, 32>}, {pipeline_mode = #tpu.pipeline_mode<synchronous>, transform_indices = @transform_5, window_bounds = array<i64: 3, 1>}, {transform_indices = @transform_6, window_bounds = array<i64: 3, 256>}]} {
    %c0 = arith.constant 0 : index
    %c0_0 = arith.constant 0 : index
    %0 = vector.load %arg1[%c0, %c0_0] : memref<3x256xf32, #tpu.memory_space<vmem>>, vector<3x256xf32>
    %c0_1 = arith.constant 0 : index
    %c0_2 = arith.constant 0 : index
    %1 = vector.load %arg2[%c0_1, %c0_2] : memref<32x3xf32, #tpu.memory_space<vmem>>, vector<32x3xf32>
    %cst = arith.constant dense<0.000000e+00> : vector<32x256xf32>
    %2 = tpu.matmul %1, %0, %cst {dimension_numbers = #tpu.dot_dimension_numbers<[1], [0], [0], [1], [0, 0, 1, 1], [], []>} : vector<32x3xf32>, vector<3x256xf32>, vector<32x256xf32> -> vector<32x256xf32>
    %c0_3 = arith.constant 0 : index
    %c0_4 = arith.constant 0 : index
    %c0_5 = arith.constant 0 : index
    %3 = vector.load %arg4[%c0_3, %c0_4, %c0_5] : memref<4x32x1xf32, #tpu.memory_space<vmem>>, vector<1x32x1xf32>
    %4 = vector.shape_cast %3 : vector<1x32x1xf32> to vector<32x1xf32>
    %5 = vector.broadcast %4 : vector<32x1xf32> to vector<32x256xf32>
    %6 = arith.addf %2, %5 : vector<32x256xf32>
    %7 = math.tanh %6 : vector<32x256xf32>
    %c0_6 = arith.constant 0 : index
    %c0_7 = arith.constant 0 : index
    %c0_8 = arith.constant 0 : index
    %8 = vector.load %arg3[%c0_6, %c0_7, %c0_8] : memref<3x32x32xf32, #tpu.memory_space<vmem>>, vector<1x32x32xf32>
    %9 = vector.shape_cast %8 : vector<1x32x32xf32> to vector<32x32xf32>
    %cst_9 = arith.constant dense<0.000000e+00> : vector<32x256xf32>
    %10 = tpu.matmul %9, %7, %cst_9 {dimension_numbers = #tpu.dot_dimension_numbers<[1], [0], [0], [1], [0, 0, 1, 1], [], []>} : vector<32x32xf32>, vector<32x256xf32>, vector<32x256xf32> -> vector<32x256xf32>
    %c1 = arith.constant 1 : index
    %c0_10 = arith.constant 0 : index
    %c0_11 = arith.constant 0 : index
    %11 = vector.load %arg4[%c1, %c0_10, %c0_11] : memref<4x32x1xf32, #tpu.memory_space<vmem>>, vector<1x32x1xf32>
    %12 = vector.shape_cast %11 : vector<1x32x1xf32> to vector<32x1xf32>
    %13 = vector.broadcast %12 : vector<32x1xf32> to vector<32x256xf32>
    %14 = arith.addf %10, %13 : vector<32x256xf32>
    %15 = math.tanh %14 : vector<32x256xf32>
    %c1_12 = arith.constant 1 : index
    %c0_13 = arith.constant 0 : index
    %c0_14 = arith.constant 0 : index
    %16 = vector.load %arg3[%c1_12, %c0_13, %c0_14] : memref<3x32x32xf32, #tpu.memory_space<vmem>>, vector<1x32x32xf32>
    %17 = vector.shape_cast %16 : vector<1x32x32xf32> to vector<32x32xf32>
    %cst_15 = arith.constant dense<0.000000e+00> : vector<32x256xf32>
    %18 = tpu.matmul %17, %15, %cst_15 {dimension_numbers = #tpu.dot_dimension_numbers<[1], [0], [0], [1], [0, 0, 1, 1], [], []>} : vector<32x32xf32>, vector<32x256xf32>, vector<32x256xf32> -> vector<32x256xf32>
    %c2 = arith.constant 2 : index
    %c0_16 = arith.constant 0 : index
    %c0_17 = arith.constant 0 : index
    %19 = vector.load %arg4[%c2, %c0_16, %c0_17] : memref<4x32x1xf32, #tpu.memory_space<vmem>>, vector<1x32x1xf32>
    %20 = vector.shape_cast %19 : vector<1x32x1xf32> to vector<32x1xf32>
    %21 = vector.broadcast %20 : vector<32x1xf32> to vector<32x256xf32>
    %22 = arith.addf %18, %21 : vector<32x256xf32>
    %23 = math.tanh %22 : vector<32x256xf32>
    %c2_18 = arith.constant 2 : index
    %c0_19 = arith.constant 0 : index
    %c0_20 = arith.constant 0 : index
    %24 = vector.load %arg3[%c2_18, %c0_19, %c0_20] : memref<3x32x32xf32, #tpu.memory_space<vmem>>, vector<1x32x32xf32>
    %25 = vector.shape_cast %24 : vector<1x32x32xf32> to vector<32x32xf32>
    %cst_21 = arith.constant dense<0.000000e+00> : vector<32x256xf32>
    %26 = tpu.matmul %25, %23, %cst_21 {dimension_numbers = #tpu.dot_dimension_numbers<[1], [0], [0], [1], [0, 0, 1, 1], [], []>} : vector<32x32xf32>, vector<32x256xf32>, vector<32x256xf32> -> vector<32x256xf32>
    %c3 = arith.constant 3 : index
    %c0_22 = arith.constant 0 : index
    %c0_23 = arith.constant 0 : index
    %27 = vector.load %arg4[%c3, %c0_22, %c0_23] : memref<4x32x1xf32, #tpu.memory_space<vmem>>, vector<1x32x1xf32>
    %28 = vector.shape_cast %27 : vector<1x32x1xf32> to vector<32x1xf32>
    %29 = vector.broadcast %28 : vector<32x1xf32> to vector<32x256xf32>
    %30 = arith.addf %26, %29 : vector<32x256xf32>
    %31 = math.tanh %30 : vector<32x256xf32>
    %c0_24 = arith.constant 0 : index
    %c0_25 = arith.constant 0 : index
    %32 = vector.load %arg5[%c0_24, %c0_25] : memref<3x32xf32, #tpu.memory_space<vmem>>, vector<3x32xf32>
    %cst_26 = arith.constant dense<0.000000e+00> : vector<3x256xf32>
    %33 = tpu.matmul %32, %31, %cst_26 {dimension_numbers = #tpu.dot_dimension_numbers<[1], [0], [0], [1], [0, 0, 1, 1], [], []>} : vector<3x32xf32>, vector<32x256xf32>, vector<3x256xf32> -> vector<3x256xf32>
    %c0_27 = arith.constant 0 : index
    %c0_28 = arith.constant 0 : index
    %34 = vector.load %arg6[%c0_27, %c0_28] : memref<3x1xf32, #tpu.memory_space<vmem>>, vector<3x1xf32>
    %35 = vector.broadcast %34 : vector<3x1xf32> to vector<3x256xf32>
    %36 = arith.addf %33, %35 : vector<3x256xf32>
    %c0_29 = arith.constant 0 : index
    %c0_30 = arith.constant 0 : index
    %37 = vector.load %arg7[%c0_29, %c0_30] : memref<3x256xf32, #tpu.memory_space<vmem>>, vector<3x256xf32>
    tpu.vector_store %arg7[%c0_29, %c0_30], %36 {strides = array<i32>} : memref<3x256xf32, #tpu.memory_space<vmem>>, vector<3x256xf32>,
    return
  }
  func.func @transform_0(%arg0: i32) -> (i32, i32) {
    %c0_i32 = arith.constant 0 : i32
    %c0_i32_0 = arith.constant 0 : i32
    return %c0_i32, %arg0 : i32, i32
  }
  func.func @transform_1(%arg0: i32) -> (i32, i32) {
    %c0_i32 = arith.constant 0 : i32
    %c0_i32_0 = arith.constant 0 : i32
    %c0_i32_1 = arith.constant 0 : i32
    return %c0_i32, %c0_i32_0 : i32, i32
  }
  func.func @transform_2(%arg0: i32) -> (i32, i32, i32) {
    %c0_i32 = arith.constant 0 : i32
    %c0_i32_0 = arith.constant 0 : i32
    %c0_i32_1 = arith.constant 0 : i32
    %c0_i32_2 = arith.constant 0 : i32
    return %c0_i32, %c0_i32_0, %c0_i32_1 : i32, i32, i32
  }
  func.func @transform_3(%arg0: i32) -> (i32, i32, i32) {
    %c0_i32 = arith.constant 0 : i32
    %c0_i32_0 = arith.constant 0 : i32
    %c0_i32_1 = arith.constant 0 : i32
    %c0_i32_2 = arith.constant 0 : i32
    return %c0_i32, %c0_i32_0, %c0_i32_1 : i32, i32, i32
  }
  func.func @transform_4(%arg0: i32) -> (i32, i32) {
    %c0_i32 = arith.constant 0 : i32
    %c0_i32_0 = arith.constant 0 : i32
    %c0_i32_1 = arith.constant 0 : i32
    return %c0_i32, %c0_i32_0 : i32, i32
  }
  func.func @transform_5(%arg0: i32) -> (i32, i32) {
    %c0_i32 = arith.constant 0 : i32
    %c0_i32_0 = arith.constant 0 : i32
    %c0_i32_1 = arith.constant 0 : i32
    return %c0_i32, %c0_i32_0 : i32, i32
  }
  func.func @transform_6(%arg0: i32) -> (i32, i32) {
    %c0_i32 = arith.constant 0 : i32
    %c0_i32_0 = arith.constant 0 : i32
    return %c0_i32, %arg0 : i32, i32
  }
}

</mosaic_0001>

<bundles_post_ra>
// kernel: tpu_custom_call.1
= control target key start
LH: loop header
LB: loop body
LE: loop exit
PB: predicated region body
PF: predicated region fallthrough
CT: control target
= control target key end

     0   :  { %vm68_vm0 = vcmask 1042432   ;;  %v852_v2 = vmov 0.0   ;;  %vm55_vm1 = vcmask 23552   ;;  %v853_v4 = vmov 0   ;;  %s1041_s0 = inlined_call_operand.vmem [shape: f32[3,256], index: 0, kind: input, shape index: {}]   ;;  %s1042_s1 = inlined_call_operand.vmem [shape: f32[32,3], index: 1, kind: input, shape index: {}]   ;;  %s1043_s2 = inlined_call_operand.vmem [shape: f32[3,32,32], index: 2, kind: input, shape index: {}]   ;;  %s1044_s3 = inlined_call_operand.vmem [shape: f32[4,32,1], index: 3, kind: input, shape index: {}]   ;;  %s1045_s4 = inlined_call_operand.vmem [shape: f32[3,32], index: 4, kind: input, shape index: {}]   ;;  %s1046_s5 = inlined_call_operand.vmem [shape: f32[3,1], index: 5, kind: input, shape index: {}]   ;;  %s1047_s6 = inlined_call_operand.hbm [shape: f32[3,256], index: 6, kind: output, shape index: {}]  }
   0x1   :  { %v24_v0 = vld [vmem:[%s1041_s0] sm:$0x77]  ;;  %137 = vmatprep.mubr.f32.mxu0 %v852_v2  ;;  %276 = vmatprep.mubr.f32.mxu1 %v852_v2  ;;  %v31_v6 = vld [vmem:[%s1044_s3 + $0x10] sm:$0xff]  ;;  %v30_v7 = vld [vmem:[%s1044_s3 + $0x8] sm:$0xff] }
   0x2   :  { %v54_v1 = vcombine.high %v24_v0, %v24_v0  ;;  %v25_v3 = vld [vmem:[%s1042_s1] sm:$0xff]  ;;  %761 = vset.pattern.permute.xlu0 %v853_v4  ;;  %762 = vset.pattern.permute.xlu1 %v853_v4  ;;  %v32_v8 = vld [vmem:[%s1044_s3 + $0x18] sm:$0xff]  ;;  %v26_v9 = vld [vmem:[%s1042_s1 + $0x8] sm:$0xff] }
   0x3   :  { %v29_v5 = vld [vmem:[%s1044_s3] sm:$0xff]  ;;  %45 = vperm.xlu1 %762, %v31_v6  }
   0x4   :  { %687 = vmatprep.subr.msk.mxu0 %vm68_vm0, %v54_v1  ;;  %35 = vperm.xlu0 %761, %v29_v5  }
   0x5   :  { %688 = vmatpush1.msk.msra.mxu0 %vm68_vm0, %v24_v0 }
   0x6   :  { %689 = vmatmul.mubr.msk.f32.vlgmr.msra.gmra.mrb[0].mxu0 %vm55_vm1, %v25_v3 }
   0x7   :  { %143 = vmatprep.mubr.f32.mxu0 %v852_v2 }
   0x8   :  { %40 = vperm.xlu0 %761, %v30_v7  }
   0x9   :  { %11 = vsyncpa [#allocation3], 0  ;;  %v693_v10 = vld [vmem:[%s1044_s3 + $0x20] sm:$0xff]  ;;  %50 = vperm.xlu1 %762, %v32_v8   ;;  %v694_v11 = vld [vmem:[%s1044_s3 + $0x28] sm:$0xff]  ;;  %vm199_vm2 = vcmask 261120   ;;  %s854_s11 = smov [#allocation2]  }
   0xa   :  { %690 = vmatmul.mubr.msk.f32.gmra.mrb[2].mxu0 %vm55_vm1, %v26_v9  ;;  %v27_v12 = vld [vmem:[%s1042_s1 + $0x10] sm:$0xff]  ;;  %v696_v14 = vld [vmem:[%s1044_s3 + $0x38] sm:$0xff]  ;;  %v705_v16 = vld [vmem:[%s1044_s3 + $0x40] sm:$0xff]  ;;  %s679_s12 = sshll.u32 %s854_s11, 4  ;;  %s680_s12 = int_to_ptr.vmem [resolvable:$true] %s679_s12 }
   0xb   :  { %149 = vmatprep.mubr.f32.mxu0 %v852_v2  ;;  %v695_v13 = vld [vmem:[%s1044_s3 + $0x30] sm:$0xff]  ;;  %v28_v15 = vld [vmem:[%s1042_s1 + $0x18] sm:$0xff]  ;;  %v706_v17 = vld [vmem:[%s1044_s3 + $0x48] sm:$0xff]  ;;  %s828_s13 = scalar_lea.vmem %s680_s12, 128  ;;  %p833_p1 = scmp.lt.s32.totalorder %s680_s12, %s680_s12 }
   0xc   :  { %181 = vperm.xlu0 %761, %v693_v10   ;;  %v707_v18 = vld [vmem:[%s1044_s3 + $0x50] sm:$0xff]  ;;  %v708_v19 = vld [vmem:[%s1044_s3 + $0x58] sm:$0xff]  ;;  %v717_v20 = vld [vmem:[%s1044_s3 + $0x60] sm:$0xff]  ;;  %p829_p0 = scmp.ne.s32.totalorder %s680_s12, %s828_s13  ;;  %p834_p2 = scmp.lt.s32.totalorder %s828_s13, %s828_s13 }
   0xd   :  { %186 = vperm.xlu1 %762, %v694_v11   ;;  %v718_v21 = vld [vmem:[%s1044_s3 + $0x68] sm:$0xff]  ;;  %v719_v22 = vld [vmem:[%s1044_s3 + $0x70] sm:$0xff]  ;;  %v720_v23 = vld [vmem:[%s1044_s3 + $0x78] sm:$0xff] }
   0xe   :  { %691 = vmatmul.mubr.msk.f32.gmra.mrb[4].mxu0 %vm55_vm1, %v27_v12  ;;  %v588_v24 = vld [vmem:[%s1046_s5] sm:$0x7]  ;;  %v171_v58 = vld [vmem:[%s1043_s2 + $0x8] sm:$0xff]  ;;  %v172_v59 = vld [vmem:[%s1043_s2 + $0x10] sm:$0xff]  ;;  %p835_p3 = por %p834_p2, %p833_p1 }
   0xf   :  { %155 = vmatprep.mubr.f32.mxu0 %v852_v2  ;;  %v170_v57 = vld [vmem:[%s1043_s2] sm:$0xff]  ;;  %v173_v60 = vld [vmem:[%s1043_s2 + $0x18] sm:$0xff] }
  0x10   :  { %191 = vperm.xlu0 %761, %v695_v13   ;;  %p836_p4 = pnand %p835_p3, %p829_p0 }
  0x11   :  { %196 = vperm.xlu1 %762, %v696_v14  }
  0x12   :  { %692 = vmatmul.mubr.msk.f32.gmra.mrb[6].mxu0 %vm55_vm1, %v28_v15 }
  0x13   :  { %415 = vmatprep.mubr.f32.mxu0 %v852_v2 }
  0x14   :  { %321 = vperm.xlu0 %761, %v705_v16  }
  0x15   :  { %326 = vperm.xlu1 %762, %v706_v17  }
  0x18   :  { %331 = vperm.xlu0 %761, %v707_v18  }
  0x19   :  { %336 = vperm.xlu1 %762, %v708_v19  }
  0x1c   :  { %460 = vperm.xlu0 %761, %v717_v20  }
  0x1d   :  { %465 = vperm.xlu1 %762, %v718_v21  }
  0x20   :  { %470 = vperm.xlu0 %761, %v719_v22  }
  0x21   :  { %475 = vperm.xlu1 %762, %v720_v23  }
  0x24   :  { %591 = vperm.xlu0 %761, %v588_v24  }
  0x82   :  { %v46_v34 = vpop.permute.xlu1 %45 }
  0x83   :  { %v36_v25 = vpop.permute.xlu0 %35 }
  0x87   :  { %v41_v30 = vpop.permute.xlu0 %40 }
  0x88   :  { %v51_v40 = vpop.permute.xlu1 %50 }
  0x8b   :  { %v182_v61 = vpop.permute.xlu0 %181 }
  0x8c   :  { %v187_v3 = vpop.permute.xlu1 %186 }
  0x8f   :  { %v192_v8 = vpop.permute.xlu0 %191 }
  0x90   :  { %v197_v13 = vpop.permute.xlu1 %196 }
  0xd9   :  { %v139_v26 = vpop.f32.mrb[0].mxu0 }
  0xda   :  { %v140_v27 = vadd.f32 %v139_v26, %v36_v25  ;;  %v141_v28 = vpop.f32.mrb[1].mxu0 }
  0xdb   :  { %v142_v29 = vadd.f32 %v141_v28, %v36_v25 }
  0xdc   :  { %764 = vtanh.f32 %v140_v27 }
  0xdd   :  { %v145_v31 = vpop.f32.mrb[2].mxu0  ;;  %766 = vtanh.f32 %v142_v29 }
  0xde   :  { %v146_v32 = vadd.f32 %v145_v31, %v41_v30  ;;  %v147_v33 = vpop.f32.mrb[3].mxu0  ;;  %v702_v31 = vld [vmem:[%s1043_s2 + $0x28] sm:$0xff] }
  0xdf   :  { %v148_v35 = vadd.f32 %v147_v33, %v41_v30  ;;  %v701_v30 = vld [vmem:[%s1043_s2 + $0x20] sm:$0xff]  ;;  %v704_v33 = vld [vmem:[%s1043_s2 + $0x38] sm:$0xff] }
  0xe0   :  { %768 = vtanh.f32 %v146_v32  ;;  %v703_v32 = vld [vmem:[%s1043_s2 + $0x30] sm:$0xff] }
  0xe1   :  { %770 = vtanh.f32 %v148_v35  ;;  %v151_v36 = vpop.f32.mrb[4].mxu0 }
  0xe2   :  { %v152_v37 = vadd.f32 %v151_v36, %v46_v34  ;;  %v153_v38 = vpop.f32.mrb[5].mxu0 }
  0xe3   :  { %v154_v39 = vadd.f32 %v153_v38, %v46_v34  ;;  %v322_v34 = vpop.permute.xlu0 %321 }
  0xe4   :  { %772 = vtanh.f32 %v152_v37 }
  0xe5   :  { %v157_v41 = vpop.f32.mrb[6].mxu0  ;;  %774 = vtanh.f32 %v154_v39  ;;  %v327_v39 = vpop.permute.xlu1 %326 }
  0xe6   :  { %v158_v42 = vadd.f32 %v157_v41, %v51_v40  ;;  %v159_v43 = vpop.f32.mrb[7].mxu0  ;;  %v765_v45 = vpop.eup %764 }
  0xe7   :  { %v160_v44 = vadd.f32 %v159_v43, %v51_v40  ;;  %v767_v46 = vpop.eup %766 }
  0xe8   :  { %776 = vtanh.f32 %v158_v42 }
  0xe9   :  { %778 = vtanh.f32 %v160_v44  ;;  %v332_v44 = vpop.permute.xlu0 %331 }
  0xea   :  { %v769_v47 = vpop.eup %768 }
  0xeb   :  { %v771_v48 = vpop.eup %770  ;;  %v728_v49 = vpack.c.bf16 %v769_v47, %v765_v45 }
  0xec   :  { %v726_v50 = vpack.c.bf16 %v771_v48, %v767_v46 }
  0xee   :  { %727 = vmatprep.subr.bf16.mxu1 %v726_v50  ;;  %v773_v51 = vpop.eup %772 }
  0xef   :  { %729 = vmatpush1.bf16.msra.mxu1 %v728_v49  ;;  %v775_v52 = vpop.eup %774  ;;  %v337_v49 = vpop.permute.xlu1 %336 }
  0xf2   :  { %v777_v53 = vpop.eup %776 }
  0xf3   :  { %v779_v54 = vpop.eup %778  ;;  %v732_v55 = vpack.c.bf16 %v777_v53, %v773_v51 }
  0xf4   :  { %v730_v56 = vpack.c.bf16 %v779_v54, %v775_v52 }
  0xf6   :  { %731 = vmatprep.subr.bf16.mxu1 %v730_v56 }
  0xf7   :  { %733 = vmatpush1.bf16.msra.mxu1 %v732_v55 }
  0xfa   :  { %697 = vmatmul.mubr.msk.f32.vlgmr.msra.gmra.mrb[0].mxu1 %vm199_vm2, %v170_v57 }
  0xfb   :  { %282 = vmatprep.mubr.f32.mxu1 %v852_v2 }
  0xfe   :  { %698 = vmatmul.mubr.msk.f32.gmra.mrb[2].mxu1 %vm199_vm2, %v171_v58 }
  0xff   :  { %288 = vmatprep.mubr.f32.mxu1 %v852_v2 }
 0x102   :  { %699 = vmatmul.mubr.msk.f32.gmra.mrb[4].mxu1 %vm199_vm2, %v172_v59 }
 0x103   :  { %294 = vmatprep.mubr.f32.mxu1 %v852_v2 }
 0x106   :  { %700 = vmatmul.mubr.msk.f32.gmra.mrb[6].mxu1 %vm199_vm2, %v173_v60 }
 0x107   :  { %554 = vmatprep.mubr.f32.mxu1 %v852_v2 }
 0x1cd   :  { %v278_v62 = vpop.f32.mrb[0].mxu1 }
 0x1ce   :  { %v279_v63 = vadd.f32 %v278_v62, %v182_v61  ;;  %v280_v0 = vpop.f32.mrb[1].mxu1 }
 0x1cf   :  { %v281_v1 = vadd.f32 %v280_v0, %v182_v61 }
 0x1d0   :  { %780 = vtanh.f32 %v279_v63 }
 0x1d1   :  { %v284_v4 = vpop.f32.mrb[2].mxu1  ;;  %782 = vtanh.f32 %v281_v1 }
 0x1d2   :  { %v285_v5 = vadd.f32 %v284_v4, %v187_v3  ;;  %v286_v6 = vpop.f32.mrb[3].mxu1  ;;  %v714_v4 = vld [vmem:[%s1043_s2 + $0x48] sm:$0xff] }
 0x1d3   :  { %v287_v7 = vadd.f32 %v286_v6, %v187_v3  ;;  %v713_v3 = vld [vmem:[%s1043_s2 + $0x40] sm:$0xff]  ;;  %v716_v6 = vld [vmem:[%s1043_s2 + $0x58] sm:$0xff] }
 0x1d4   :  { %784 = vtanh.f32 %v285_v5  ;;  %v715_v5 = vld [vmem:[%s1043_s2 + $0x50] sm:$0xff] }
 0x1d5   :  { %786 = vtanh.f32 %v287_v7  ;;  %v290_v9 = vpop.f32.mrb[4].mxu1  ;;  %v461_v7 = vpop.permute.xlu0 %460 }
 0x1d6   :  { %v291_v10 = vadd.f32 %v290_v9, %v192_v8  ;;  %v292_v11 = vpop.f32.mrb[5].mxu1 }
 0x1d7   :  { %v293_v12 = vadd.f32 %v292_v11, %v192_v8 }
 0x1d8   :  { %788 = vtanh.f32 %v291_v10 }
 0x1d9   :  { %v296_v14 = vpop.f32.mrb[6].mxu1  ;;  %790 = vtanh.f32 %v293_v12  ;;  %v466_v12 = vpop.permute.xlu1 %465 }
 0x1da   :  { %v297_v15 = vadd.f32 %v296_v14, %v197_v13  ;;  %v298_v16 = vpop.f32.mrb[7].mxu1  ;;  %v781_v18 = vpop.eup %780 }
 0x1db   :  { %v299_v17 = vadd.f32 %v298_v16, %v197_v13  ;;  %v783_v19 = vpop.eup %782 }
 0x1dc   :  { %792 = vtanh.f32 %v297_v15 }
 0x1dd   :  { %794 = vtanh.f32 %v299_v17 }
 0x1de   :  { %v785_v20 = vpop.eup %784 }
 0x1df   :  { %v787_v21 = vpop.eup %786  ;;  %v736_v22 = vpack.c.bf16 %v785_v20, %v781_v18 }
 0x1e0   :  { %v734_v23 = vpack.c.bf16 %v787_v21, %v783_v19  ;;  %v476_v21 = vpop.permute.xlu1 %475 }
 0x1e2   :  { %735 = vmatprep.subr.bf16.mxu0 %v734_v23  ;;  %v789_v24 = vpop.eup %788 }
 0x1e3   :  { %737 = vmatpush1.bf16.msra.mxu0 %v736_v22  ;;  %v791_v25 = vpop.eup %790 }
 0x1e6   :  { %v793_v26 = vpop.eup %792 }
 0x1e7   :  { %v795_v27 = vpop.eup %794  ;;  %v740_v28 = vpack.c.bf16 %v793_v26, %v789_v24 }
 0x1e8   :  { %v738_v29 = vpack.c.bf16 %v795_v27, %v791_v25 }
 0x1ea   :  { %739 = vmatprep.subr.bf16.mxu0 %v738_v29 }
 0x1eb   :  { %741 = vmatpush1.bf16.msra.mxu0 %v740_v28 }
 0x1ee   :  { %709 = vmatmul.mubr.msk.f32.vlgmr.msra.gmra.mrb[8].mxu0 %vm199_vm2, %v701_v30 }
 0x1ef   :  { %421 = vmatprep.mubr.f32.mxu0 %v852_v2 }
 0x1f2   :  { %710 = vmatmul.mubr.msk.f32.gmra.mrb[10].mxu0 %vm199_vm2, %v702_v31 }
 0x1f3   :  { %427 = vmatprep.mubr.f32.mxu0 %v852_v2 }
 0x1f6   :  { %711 = vmatmul.mubr.msk.f32.gmra.mrb[12].mxu0 %vm199_vm2, %v703_v32 }
 0x1f7   :  { %433 = vmatprep.mubr.f32.mxu0 %v852_v2 }
 0x1fa   :  { %712 = vmatmul.mubr.msk.f32.gmra.mrb[14].mxu0 %vm199_vm2, %v704_v33 }
 0x1fb   :  { %661 = vmatprep.mubr.f32.mxu0 %v852_v2 }
 0x2c1   :  { %v417_v35 = vpop.f32.mrb[8].mxu0 }
 0x2c2   :  { %v418_v36 = vadd.f32 %v417_v35, %v322_v34  ;;  %v419_v37 = vpop.f32.mrb[9].mxu0 }
 0x2c3   :  { %v420_v38 = vadd.f32 %v419_v37, %v322_v34 }
 0x2c4   :  { %796 = vtanh.f32 %v418_v36 }
 0x2c5   :  { %v423_v40 = vpop.f32.mrb[10].mxu0  ;;  %798 = vtanh.f32 %v420_v38  ;;  %v587_v38 = vld [vmem:[%s1045_s4] sm:$0x7] }
 0x2c6   :  { %v424_v41 = vadd.f32 %v423_v40, %v327_v39  ;;  %v425_v42 = vpop.f32.mrb[11].mxu0 }
 0x2c7   :  { %v426_v43 = vadd.f32 %v425_v42, %v327_v39 }
 0x2c8   :  { %800 = vtanh.f32 %v424_v41 }
 0x2c9   :  { %802 = vtanh.f32 %v426_v43  ;;  %v429_v45 = vpop.f32.mrb[12].mxu0 }
 0x2ca   :  { %v430_v46 = vadd.f32 %v429_v45, %v332_v44  ;;  %v431_v47 = vpop.f32.mrb[13].mxu0 }
 0x2cb   :  { %v432_v48 = vadd.f32 %v431_v47, %v332_v44 }
 0x2cc   :  { %804 = vtanh.f32 %v430_v46 }
 0x2cd   :  { %v435_v50 = vpop.f32.mrb[14].mxu0  ;;  %806 = vtanh.f32 %v432_v48 }
 0x2ce   :  { %v436_v51 = vadd.f32 %v435_v50, %v337_v49  ;;  %v437_v52 = vpop.f32.mrb[15].mxu0  ;;  %v797_v54 = vpop.eup %796 }
 0x2cf   :  { %v438_v53 = vadd.f32 %v437_v52, %v337_v49  ;;  %v799_v55 = vpop.eup %798 }
 0x2d0   :  { %808 = vtanh.f32 %v436_v51 }
 0x2d1   :  { %810 = vtanh.f32 %v438_v53 }
 0x2d2   :  { %v801_v56 = vpop.eup %800 }
 0x2d3   :  { %v803_v57 = vpop.eup %802  ;;  %v744_v58 = vpack.c.bf16 %v801_v56, %v797_v54 }
 0x2d4   :  { %v742_v59 = vpack.c.bf16 %v803_v57, %v799_v55 }
 0x2d6   :  { %743 = vmatprep.subr.bf16.mxu1 %v742_v59  ;;  %v805_v60 = vpop.eup %804 }
 0x2d7   :  { %745 = vmatpush1.bf16.msra.mxu1 %v744_v58  ;;  %v807_v61 = vpop.eup %806 }
 0x2da   :  { %v809_v62 = vpop.eup %808 }
 0x2db   :  { %v811_v63 = vpop.eup %810  ;;  %v748_v0 = vpack.c.bf16 %v809_v62, %v805_v60 }
 0x2dc   :  { %v746_v1 = vpack.c.bf16 %v811_v63, %v807_v61 }
 0x2de   :  { %747 = vmatprep.subr.bf16.mxu1 %v746_v1 }
 0x2df   :  { %749 = vmatpush1.bf16.msra.mxu1 %v748_v0 }
 0x2e2   :  { %721 = vmatmul.mubr.msk.f32.vlgmr.msra.gmra.mrb[8].mxu1 %vm199_vm2, %v713_v3 }
 0x2e3   :  { %560 = vmatprep.mubr.f32.mxu1 %v852_v2 }
 0x2e6   :  { %722 = vmatmul.mubr.msk.f32.gmra.mrb[10].mxu1 %vm199_vm2, %v714_v4 }
 0x2e7   :  { %566 = vmatprep.mubr.f32.mxu1 %v852_v2 }
 0x2ea   :  { %723 = vmatmul.mubr.msk.f32.gmra.mrb[12].mxu1 %vm199_vm2, %v715_v5 }
 0x2eb   :  { %572 = vmatprep.mubr.f32.mxu1 %v852_v2  ;;  %v471_v2 = vpop.permute.xlu0 %470 }
 0x2ee   :  { %724 = vmatmul.mubr.msk.f32.gmra.mrb[14].mxu1 %vm199_vm2, %v716_v6 }
 0x2ef   :  { %v592_v39 = vpop.permute.xlu0 %591 }
 0x3b5   :  { %v556_v8 = vpop.f32.mrb[8].mxu1 }
 0x3b6   :  { %v557_v9 = vadd.f32 %v556_v8, %v461_v7  ;;  %v558_v10 = vpop.f32.mrb[9].mxu1 }
 0x3b7   :  { %v559_v11 = vadd.f32 %v558_v10, %v461_v7 }
 0x3b8   :  { %812 = vtanh.f32 %v557_v9 }
 0x3b9   :  { %v562_v13 = vpop.f32.mrb[10].mxu1  ;;  %814 = vtanh.f32 %v559_v11 }
 0x3ba   :  { %v563_v14 = vadd.f32 %v562_v13, %v466_v12  ;;  %v564_v15 = vpop.f32.mrb[11].mxu1 }
 0x3bb   :  { %v565_v16 = vadd.f32 %v564_v15, %v466_v12 }
 0x3bc   :  { %816 = vtanh.f32 %v563_v14 }
 0x3bd   :  { %818 = vtanh.f32 %v565_v16  ;;  %v568_v17 = vpop.f32.mrb[12].mxu1 }
 0x3be   :  { %v569_v18 = vadd.f32 %v568_v17, %v471_v2  ;;  %v570_v19 = vpop.f32.mrb[13].mxu1 }
 0x3bf   :  { %v571_v20 = vadd.f32 %v570_v19, %v471_v2 }
 0x3c0   :  { %820 = vtanh.f32 %v569_v18 }
 0x3c1   :  { %v574_v22 = vpop.f32.mrb[14].mxu1  ;;  %822 = vtanh.f32 %v571_v20 }
 0x3c2   :  { %v575_v23 = vadd.f32 %v574_v22, %v476_v21  ;;  %v576_v24 = vpop.f32.mrb[15].mxu1  ;;  %v813_v26 = vpop.eup %812 }
 0x3c3   :  { %v577_v25 = vadd.f32 %v576_v24, %v476_v21  ;;  %v815_v27 = vpop.eup %814 }
 0x3c4   :  { %824 = vtanh.f32 %v575_v23 }
 0x3c5   :  { %826 = vtanh.f32 %v577_v25 }
 0x3c6   :  { %v817_v28 = vpop.eup %816 }
 0x3c7   :  { %v819_v29 = vpop.eup %818  ;;  %v752_v30 = vpack.c.bf16 %v817_v28, %v813_v26 }
 0x3c8   :  { %v750_v31 = vpack.c.bf16 %v819_v29, %v815_v27 }
 0x3ca   :  { %751 = vmatprep.subr.bf16.mxu0 %v750_v31  ;;  %v821_v32 = vpop.eup %820 }
 0x3cb   :  { %753 = vmatpush1.bf16.msra.mxu0 %v752_v30  ;;  %v823_v33 = vpop.eup %822 }
 0x3ce   :  { %v825_v34 = vpop.eup %824 }
 0x3cf   :  { %v827_v35 = vpop.eup %826  ;;  %v756_v36 = vpack.c.bf16 %v825_v34, %v821_v32 }
 0x3d0   :  { %v754_v37 = vpack.c.bf16 %v827_v35, %v823_v33 }
 0x3d2   :  { %755 = vmatprep.subr.bf16.mxu0 %v754_v37 }
 0x3d3   :  { %757 = vmatpush1.bf16.msra.mxu0 %v756_v36 }
 0x3d6   :  { %725 = vmatmul.mubr.msk.f32.vlgmr.msra.gmra.mrb[16].mxu0 %vm199_vm2, %v587_v38 }
 0x4a9   :  { %v663_v40 = vpop.f32.mrb[16].mxu0 }
 0x4aa   :  { %v664_v41 = vadd.f32 %v663_v40, %v592_v39  ;;  %v665_v42 = vpop.f32.mrb[17].mxu0 }
 0x4ab   :  { %v666_v43 = vadd.f32 %v665_v42, %v592_v39 }
 0x4ad   :  { %v670_v44 = vcombine.low %v664_v41, %v666_v43 }
 0x4af   :  { %672 = vst [vmem:[#allocation2] sm:$0x77] %v670_v44 }
 0x4b0   :  { %839 = shalt.err (!%p836_p4)
}
 0x4b1   :  { %s840_s5 = scalar_lea.hbm %s1047_s6, 128 }
 0x4b2   :  { %p841_p5 = scmp.ne.s32.totalorder %s1047_s6, %s840_s5  ;;  %p844_p6 = scmp.lt.u32.totalorder %s840_s5, %s1047_s6 }
 0x4b4   :  { %p846_p7 = pnand %p844_p6, %p841_p5 }
 0x4b6   :  { %849 = shalt.err (!%p846_p7)
}
 0x4b7   :  { %682 = dma.vmem_to_hbm [thread:$0]  %s680_s12, 128, %s1047_s6, [#allocation3]  }
 0x4b8   :  { %850 = dma.done.wait [#allocation3], 128  }
 0x4b9   :  { %851 = vsyncadd [#allocation3], 4294967168 }
 0x4ba   :  { %686 = vsyncpa [#allocation3], 1 }

</bundles_post_ra>
